<compile_context>
chip_gen: v5e
topology: v5e:2x2
jax: 0.10.0
libtpu: 0.0.40
codegen_flags: <defaults>
</compile_context>

<pallas_src>
import jax
import jax.numpy as jnp
from jax.experimental import pallas as pl
from jax.experimental.pallas import tpu as pltpu


_SMALL_COPY_BYTES = 2 * 1024 * 1024  # below this, a single DMA is optimal


def _max_inflight_dmas() -> int:
    """In-flight DMA count for large copies: 4 on v7x, 2 on v5e/v6e/other."""
    try:
        kind = jax.devices()[0].device_kind.lower()
        if "v7" in kind:
            return 4
    except Exception:  # pragma: no cover - conservative fallback
        pass
    return 2


def _make_copy_kernel(split_axis, starts, sizes):
    """Kernel copying x -> o via chunked HBM->HBM DMAs (all in flight, then wait)."""
    nchunks = len(starts)

    def kernel(x_ref, o_ref, sems):
        copies = []
        if nchunks == 1:
            # Whole-array single DMA: no slicing overhead at all.
            cp = pltpu.make_async_copy(x_ref, o_ref, sems.at[0])
            cp.start()
            copies.append(cp)
        else:
            for c in range(nchunks):
                idx = (slice(None),) * split_axis + (pl.ds(starts[c], sizes[c]),)
                cp = pltpu.make_async_copy(x_ref.at[idx], o_ref.at[idx], sems.at[c])
                cp.start()
                copies.append(cp)
        for cp in copies:
            cp.wait()

    return kernel


def identity(x: jax.Array, *, force_pallas_copy: bool = False) -> jax.Array:
    """Identity forward pass.

    Default: returns x unchanged (zero work — the optimal implementation).
    force_pallas_copy=True: returns a fresh copy produced by a Pallas kernel
    (single HBM read + write via direct HBM->HBM DMAs).
    """
    if not force_pallas_copy:
        # nn.Identity: no HBM traffic, no launch, no fusion barrier.
        return x

    if x.ndim == 0 or x.size == 0:
        # A few-byte DMA behind a full custom call is pure overhead.
        return x

    nbytes = x.size * x.dtype.itemsize
    nchunks = 1 if nbytes <= _SMALL_COPY_BYTES else _max_inflight_dmas()

    # Split along axis 0 when it is large enough; otherwise along the largest
    # axis, so the in-flight DMA count does not depend on the leading dim.
    if x.shape[0] >= nchunks:
        split_axis = 0
    else:
        split_axis = int(max(range(x.ndim), key=lambda d: x.shape[d]))
    extent = x.shape[split_axis]
    nchunks = max(1, min(nchunks, extent))

    bounds = [(c * extent) // nchunks for c in range(nchunks + 1)]
    starts = bounds[:-1]
    sizes = [bounds[c + 1] - bounds[c] for c in range(nchunks)]

    return pl.pallas_call(
        _make_copy_kernel(split_axis, starts, sizes),
        out_shape=jax.ShapeDtypeStruct(x.shape, x.dtype),
        in_specs=[pl.BlockSpec(memory_space=pl.ANY)],
        out_specs=pl.BlockSpec(memory_space=pl.ANY),
        scratch_shapes=[pltpu.SemaphoreType.DMA((nchunks,))],
        cost_estimate=pl.CostEstimate(
            flops=0, transcendentals=0, bytes_accessed=2 * nbytes
        ),
    )(x)


if __name__ == "__main__":
    key = jax.random.PRNGKey(0)
    # Small NCHW input consistent with a generic conv-style module.
    x = jax.random.normal(key, (2, 4, 16, 16), dtype=jnp.float32)

    # Primary (optimal) path: identity is a no-op.
    y_fast = identity(x)
    jax.block_until_ready(y_fast)
    assert y_fast.shape == x.shape
    assert y_fast.dtype == x.dtype
    assert bool(jnp.all(y_fast == x))

    # Fallback Pallas-kernel path (explicit HBM->HBM copy), run once.
    y_kernel = identity(x, force_pallas_copy=True)
    jax.block_until_ready(y_kernel)
    assert y_kernel.shape == x.shape
    assert y_kernel.dtype == x.dtype
    assert bool(jnp.all(y_kernel == x))

    print("KERNEL_OK")
</pallas_src>

<mosaic_0001>
module attributes {stable_mosaic.version = 11 : i64} {
  func.func @kernel(%arg0: memref<2x4x16x16xf32, #tpu.memory_space<any>>, %arg1: memref<2x4x16x16xf32, #tpu.memory_space<any>>, %arg2: memref<1x!tpu.dma_semaphore, #tpu.memory_space<semaphore_mem>>) attributes {dimension_semantics = [], scalar_prefetch = 0 : i64, scratch_operands = 1 : i64, tpu.core_type = #tpu.core_type<tc>} {
    %c0_i32 = arith.constant 0 : i32
    %0 = tpu.memref_slice %arg2[%c0_i32] : memref<1x!tpu.dma_semaphore, #tpu.memory_space<semaphore_mem>> -> memref<1x!tpu.dma_semaphore, #tpu.memory_space<semaphore_mem>>
    %1 = tpu.memref_squeeze %0 : memref<1x!tpu.dma_semaphore, #tpu.memory_space<semaphore_mem>> -> memref<!tpu.dma_semaphore, #tpu.memory_space<semaphore_mem>>
    tpu.enqueue_dma source(%arg0 : memref<2x4x16x16xf32, #tpu.memory_space<any>>) target(%arg1 : memref<2x4x16x16xf32, #tpu.memory_space<any>>) target_semaphore(%1 : memref<!tpu.dma_semaphore, #tpu.memory_space<semaphore_mem>>)
    %c0_i32_0 = arith.constant 0 : i32
    %2 = tpu.memref_slice %arg2[%c0_i32_0] : memref<1x!tpu.dma_semaphore, #tpu.memory_space<semaphore_mem>> -> memref<1x!tpu.dma_semaphore, #tpu.memory_space<semaphore_mem>>
    %3 = tpu.memref_squeeze %2 : memref<1x!tpu.dma_semaphore, #tpu.memory_space<semaphore_mem>> -> memref<!tpu.dma_semaphore, #tpu.memory_space<semaphore_mem>>
    tpu.wait_dma2 semaphore(%3 : memref<!tpu.dma_semaphore, #tpu.memory_space<semaphore_mem>>) src(%arg0 : memref<2x4x16x16xf32, #tpu.memory_space<any>>) dst(%arg1 : memref<2x4x16x16xf32, #tpu.memory_space<any>>)
    return
  }
}

</mosaic_0001>

<bundles_post_ra>
// kernel: tpu_custom_call.1
= control target key start
LH: loop header
LB: loop body
LE: loop exit
PB: predicated region body
PF: predicated region fallthrough
CT: control target
= control target key end

     0   :  { %s34_s12 = smov [#allocation2]   ;;  %s35_s13 = smov [#allocation3]   ;;  %s53_s0 = inlined_call_operand.hbm [shape: f32[2,4,16,16], index: 0, kind: input, shape index: {}]   ;;  %s54_s1 = inlined_call_operand.hbm [shape: f32[2,4,16,16], index: 1, kind: output, shape index: {}]  }
   0x1   :  { %s10_s8 = sshll.u32 %s53_s0, 4  ;;  %s12_s11 = sshll.u32 %s54_s1, 4  ;;  %s11_s8 = int_to_ptr.hbm [resolvable:$true] %s10_s8  ;;  %s13_s11 = int_to_ptr.hbm [resolvable:$true] %s12_s11 }
   0x2   :  { %s36_s14 = smov 0  }
   0x3   :  { %16 = dma.general %s11_s8, 2048, %s13_s11, %s34_s12, %s35_s13, [#allocation4], %s36_s14, 0  }
   0x4   :  { %32 = dma.done.wait [#allocation2], 2048 }
   0x5   :  { %33 = vsyncadd [#allocation2], 4294965248 }
   0x6   :  { %22 = vsyncmov [#allocation2] }
   0x9   :  { %s23_s15 = vpop.sfrf %22 }
   0xa   :  { %p28_p0 = scmp.ne.s32.totalorder %s23_s15, 0 }
   0xc   :  { %27 = shalt.err (%p28_p0)  }

</bundles_post_ra>
